<compile_context>
chip_gen: v5e
topology: v5e:2x2
jax: 0.10.0
libtpu: 0.0.40
codegen_flags: <defaults>
</compile_context>

<pallas_src>
import math

import jax
import jax.numpy as jnp
from jax.experimental import pallas as pl
from jax.experimental.pallas import tpu as pltpu


def _round_up(x, m):
    return ((x + m - 1) // m) * m


def _pi_attention_kernel(demo_ref, obs_ref, len_ref,
                         wqkr_ref, bqkr_ref, seg_ref, expd_ref,
                         w1pr_ref, w1o_ref, b1_ref, w2_ref, b2_ref,
                         out_ref):
    """One row-tile: attention read-out + pi-head MLP.

    demo_ref : (TN, L*D) f32   demonstration tokens, lane-dense flat layout
    obs_ref  : (TN, D)   f32   current observation (query + MLP input)
    len_ref  : (TN, 1)   int32 valid demonstration length per row
    wqkr_ref : (D, L*D)  bf16  tile(wq @ wk^T / sqrt(H), L)  (query -> flat key space)
    bqkr_ref : (1, L*D)  f32   tile(bq @ wk^T / sqrt(H), L)
    seg_ref  : (L*D, L)  bf16  0/1 segment-sum indicator (sum over D per slot)
    expd_ref : (L, L*D)  bf16  0/1 expand indicator (replicate p over D lanes)
    w1pr_ref : (L*D, 2H) bf16  tile(wv @ w1_ctx, L)  (pooling fused into MLP-1)
    w1o_ref  : (D, 2H)   bf16  MLP-1 weight for the obs part
    b1_ref   : (1, 2H)   f32   b1 + bv @ w1_ctx
    w2_ref   : (2H, 2A)  bf16  fused [w2_mu | w2_logstd]
    b2_ref   : (1, 2A)   f32
    out_ref  : (TN, 2A)  f32   fused [mu | log_std]
    """
    demo = demo_ref[...]                                  # (TN, L*D) f32
    obs = obs_ref[...]                                    # (TN, D)   f32
    lens = len_ref[...]                                   # (TN, 1)   int32
    obs_bf = obs.astype(jnp.bfloat16)

    # Query projected into key space and replicated over the L demo slots in
    # one dense MXU matmul (the replication is folded into the weight).
    qk_rep = jnp.dot(obs_bf, wqkr_ref[...],
                     preferred_element_type=jnp.float32) + bqkr_ref[...]

    # Attention scores: lane-dense VPU multiply on the flat layout, then a
    # single full-tile matmul against the 0/1 segment-sum indicator
    # (no per-row q=1 batched matmuls).
    prod = (qk_rep * demo).astype(jnp.bfloat16)           # (TN, L*D)
    s = jnp.dot(prod, seg_ref[...],
                preferred_element_type=jnp.float32)       # (TN, L)

    # Masked softmax over the valid demonstration length.
    pos = jax.lax.broadcasted_iota(jnp.int32, s.shape, 1)
    s = jnp.where(pos < lens, s, -1e30)
    # NOTE: rows with length == 0 degrade to a uniform distribution over the
    # padded tokens (same behaviour as the un-optimized version).
    m = jnp.max(s, axis=-1, keepdims=True)
    e = jnp.exp(s - m)
    p = e * pl.reciprocal(jnp.sum(e, axis=-1, keepdims=True), approx=True)

    # Attention pooling fused with the context half of MLP layer 1:
    #   hid_ctx = (sum_l p_l * demo_l) @ (wv @ w1_ctx)
    # Expand p back to the flat (l, d) lanes with one small dot, VPU multiply,
    # then one K=L*D matmul against the row-tiled folded weight.
    p_rep = jnp.dot(p.astype(jnp.bfloat16), expd_ref[...],
                    preferred_element_type=jnp.float32)   # (TN, L*D)
    weighted = (p_rep * demo).astype(jnp.bfloat16)
    hid = jnp.dot(weighted, w1pr_ref[...], preferred_element_type=jnp.float32)
    hid = hid + jnp.dot(obs_bf, w1o_ref[...], preferred_element_type=jnp.float32)
    hid = jnp.maximum(hid + b1_ref[...], 0.0)             # (TN, 2H) f32

    # Fused mu / log_std head -> single output store.
    out_ref[...] = (jnp.dot(hid.astype(jnp.bfloat16), w2_ref[...],
                            preferred_element_type=jnp.float32) + b2_ref[...])


def init_params(key, state_dim, lstm_size, action_size):
    """Deterministic synthetic parameters (shapes implied by the module)."""
    d, h, a = state_dim, lstm_size, action_size
    hid = 2 * lstm_size
    keys = jax.random.split(key, 13)

    def lin(k, fan_in, shape):
        return jax.random.normal(k, shape, jnp.float32) / math.sqrt(fan_in)

    def bias(k, shape):
        return 0.1 * jax.random.normal(k, shape, jnp.float32)

    return {
        # AttentionModel projections
        "wq": lin(keys[0], d, (d, h)), "bq": bias(keys[7], (1, h)),
        "wk": lin(keys[1], d, (d, h)), "bk": bias(keys[8], (1, h)),
        "wv": lin(keys[2], d, (d, h)), "bv": bias(keys[9], (1, h)),
        # pi_head MlpModel: Linear(h + d -> 2h), ReLU, Linear(2h -> 2a)
        "w1c": lin(keys[3], h + d, (h, hid)),
        "w1o": lin(keys[4], h + d, (d, hid)),
        "b1": bias(keys[10], (1, hid)),
        "w2mu": lin(keys[5], hid, (hid, a)), "b2mu": bias(keys[11], (1, a)),
        "w2ls": lin(keys[6], hid, (hid, a)), "b2ls": bias(keys[12], (1, a)),
    }


def pi_attention_forward(params, demonstration, demonstration_lengths, state,
                         rnn_state=None, row_tile=1024):
    """demonstration: (T,B,L,D); demonstration_lengths: (T,B) int;
    state: (T,B,D). Returns mu (T,B,A), log_std (T,B,A), rnn_state."""
    T, B, L, D = demonstration.shape
    N = T * B
    H = params["wq"].shape[1]
    A = params["w2mu"].shape[1]
    HID = params["w1c"].shape[1]
    LD = L * D
    f32, bf16 = jnp.float32, jnp.bfloat16

    # ---- exact algebraic parameter folds (done once, outside the kernel) ----
    inv_sqrt_h = 1.0 / math.sqrt(H)
    wqk = (params["wq"].astype(f32) @ params["wk"].astype(f32).T) * inv_sqrt_h
    bqk = (params["bq"].astype(f32) @ params["wk"].astype(f32).T) * inv_sqrt_h
    # bk drops out: a per-row constant added to every score is softmax-invariant.
    wqk_rep = jnp.tile(wqk, (1, L)).astype(bf16)          # (D, L*D)
    bqk_rep = jnp.tile(bqk, (1, L)).astype(f32)           # (1, L*D)

    w1p = params["wv"].astype(f32) @ params["w1c"].astype(f32)        # (D, HID)
    w1p_rep = jnp.tile(w1p, (L, 1)).astype(bf16)                      # (L*D, HID)
    b1f = (params["b1"].astype(f32)
           + params["bv"].astype(f32) @ params["w1c"].astype(f32))    # (1, HID)
    w1o = params["w1o"].astype(bf16)                                  # (D, HID)
    w2 = jnp.concatenate([params["w2mu"], params["w2ls"]], axis=1).astype(bf16)
    b2 = jnp.concatenate([params["b2mu"], params["b2ls"]], axis=1).astype(f32)

    # 0/1 indicator matrices for segment-sum over D and expand over L.
    eye_l = jnp.eye(L, dtype=f32)
    seg = jnp.repeat(eye_l, D, axis=0).astype(bf16)       # (L*D, L)
    expd = jnp.repeat(eye_l, D, axis=1).astype(bf16)      # (L, L*D)

    # lengths taken from the first time step, broadcast over T (row n = t*B + b)
    lengths_b = demonstration_lengths.reshape(T, B)[0]
    lengths_n = jnp.tile(lengths_b, (T,)).reshape(N, 1).astype(jnp.int32)

    # Lane-dense flat demo layout; contiguous reshape, original dtype (no extra
    # HBM cast pass — all narrowing happens on-chip inside the kernel).
    demo = demonstration.reshape(N, LD).astype(f32)
    obs = state.reshape(N, D).astype(f32)

    # ---- row-tile selection: multiple of 8, <= row_tile, and >= 2 grid steps
    # when there is enough work (so v7x megacore can shard the row axis). ----
    n8 = _round_up(N, 8)
    tn = min(row_tile, n8)
    if n8 > 8 and 2 * tn > n8:
        tn = _round_up((n8 + 1) // 2, 8)
    grid_n = pl.cdiv(n8, tn)
    n_pad = grid_n * tn
    if n_pad != N:
        demo = jnp.pad(demo, ((0, n_pad - N), (0, 0)))
        obs = jnp.pad(obs, ((0, n_pad - N), (0, 0)))
        lengths_n = jnp.pad(lengths_n, ((0, n_pad - N), (0, 0)), constant_values=1)

    row = lambda i: (i, 0)
    const = lambda i: (0, 0)

    out = pl.pallas_call(
        _pi_attention_kernel,
        out_shape=jax.ShapeDtypeStruct((n_pad, 2 * A), f32),
        grid=(grid_n,),
        in_specs=[
            pl.BlockSpec((tn, LD), row),          # demonstration rows (flat)
            pl.BlockSpec((tn, D), row),           # current obs rows
            pl.BlockSpec((tn, 1), row),           # valid lengths
            pl.BlockSpec((D, LD), const),         # wqk_rep (resident)
            pl.BlockSpec((1, LD), const),         # bqk_rep
            pl.BlockSpec((LD, L), const),         # segment-sum indicator
            pl.BlockSpec((L, LD), const),         # expand indicator
            pl.BlockSpec((LD, HID), const),       # w1p_rep
            pl.BlockSpec((D, HID), const),        # w1o
            pl.BlockSpec((1, HID), const),        # b1f
            pl.BlockSpec((HID, 2 * A), const),    # w2 [mu | log_std]
            pl.BlockSpec((1, 2 * A), const),      # b2
        ],
        out_specs=pl.BlockSpec((tn, 2 * A), row),
        compiler_params=pltpu.CompilerParams(
            dimension_semantics=("parallel",)),
    )(demo, obs, lengths_n, wqk_rep, bqk_rep, seg, expd,
      w1p_rep, w1o, b1f, w2, b2)

    out = out[:N]
    mu = out[:, :A].reshape(T, B, A)
    log_std = out[:, A:].reshape(T, B, A)
    # TODO(synk): AttentionModel's recurrent internals are not in the provided
    # source; rnn_state is passed through unchanged.
    return mu, log_std, rnn_state


def _reference_forward(params, demonstration, demonstration_lengths, state):
    """Pure-JAX f32 reference (un-folded math)."""
    T, B, L, D = demonstration.shape
    H = params["wq"].shape[1]
    A = params["w2mu"].shape[1]
    demo = demonstration.reshape(T * B, L, D).astype(jnp.float32)
    obs = state.reshape(T * B, D).astype(jnp.float32)
    lens = jnp.tile(demonstration_lengths.reshape(T, B)[0], (T,)).reshape(T * B, 1)

    q = obs @ params["wq"] + params["bq"]
    k = jnp.einsum("nld,dh->nlh", demo, params["wk"]) + params["bk"]
    v = jnp.einsum("nld,dh->nlh", demo, params["wv"]) + params["bv"]
    s = jnp.einsum("nh,nlh->nl", q, k) / math.sqrt(H)
    mask = jnp.arange(L)[None, :] < lens
    s = jnp.where(mask, s, -1e30)
    p = jax.nn.softmax(s, axis=-1)
    ctx = jnp.einsum("nl,nlh->nh", p, v)

    x = jnp.concatenate([ctx, obs], axis=-1)
    w1 = jnp.concatenate([params["w1c"], params["w1o"]], axis=0)
    hid = jax.nn.relu(x @ w1 + params["b1"])
    w2 = jnp.concatenate([params["w2mu"], params["w2ls"]], axis=1)
    b2 = jnp.concatenate([params["b2mu"], params["b2ls"]], axis=1)
    out = hid @ w2 + b2
    return out[:, :A].reshape(T, B, A), out[:, A:].reshape(T, B, A)


if __name__ == "__main__":
    T, B = 2, 2                 # leading time / batch dims
    STATE_DIM = 32              # observation_shape.state[0]
    LSTM_SIZE = 32
    ACTION_SIZE = 4
    MAX_DEMO_LEN = 8            # observation_shape.demonstration[0]

    key = jax.random.PRNGKey(0)
    k_par, k_demo, k_obs = jax.random.split(key, 3)

    params = init_params(k_par, STATE_DIM, LSTM_SIZE, ACTION_SIZE)
    demonstration = jax.random.normal(
        k_demo, (T, B, MAX_DEMO_LEN, STATE_DIM), jnp.float32)
    state = jax.random.normal(k_obs, (T, B, STATE_DIM), jnp.float32)
    demonstration_lengths = jnp.broadcast_to(
        jnp.array([3, 6], jnp.int32), (T, B))          # per-batch valid lengths
    rnn_state = jnp.zeros((2, B, LSTM_SIZE), jnp.float32)  # passed through

    mu, log_std, rnn_state_out = pi_attention_forward(
        params, demonstration, demonstration_lengths, state, rnn_state)
    jax.block_until_ready((mu, log_std))

    assert mu.shape == (T, B, ACTION_SIZE)
    assert log_std.shape == (T, B, ACTION_SIZE)
    assert bool(jnp.all(jnp.isfinite(mu))) and bool(jnp.all(jnp.isfinite(log_std)))

    mu_ref, ls_ref = _reference_forward(
        params, demonstration, demonstration_lengths, state)
    err = max(float(jnp.max(jnp.abs(mu - mu_ref))),
              float(jnp.max(jnp.abs(log_std - ls_ref))))
    assert err < 0.2, f"mismatch vs pure-JAX reference: max abs err = {err}"
    print("KERNEL_OK")
</pallas_src>

<mosaic_0001>
module attributes {stable_mosaic.version = 11 : i64} {
  func.func @_pi_attention_kernel(%arg0: i32, %arg1: memref<8x256xf32, #tpu.memory_space<vmem>>, %arg2: memref<8x32xf32, #tpu.memory_space<vmem>>, %arg3: memref<8x1xi32, #tpu.memory_space<vmem>>, %arg4: memref<32x256xbf16, #tpu.memory_space<vmem>>, %arg5: memref<1x256xf32, #tpu.memory_space<vmem>>, %arg6: memref<256x8xbf16, #tpu.memory_space<vmem>>, %arg7: memref<8x256xbf16, #tpu.memory_space<vmem>>, %arg8: memref<256x64xbf16, #tpu.memory_space<vmem>>, %arg9: memref<32x64xbf16, #tpu.memory_space<vmem>>, %arg10: memref<1x64xf32, #tpu.memory_space<vmem>>, %arg11: memref<64x8xbf16, #tpu.memory_space<vmem>>, %arg12: memref<1x8xf32, #tpu.memory_space<vmem>>, %arg13: memref<8x8xf32, #tpu.memory_space<vmem>>) attributes {dimension_semantics = [#tpu.dimension_semantics<parallel>], iteration_bounds = array<i64: 1>, scalar_prefetch = 0 : i64, scratch_operands = 0 : i64, tpu.core_type = #tpu.core_type<tc>, window_params = [{transform_indices = @transform_0, window_bounds = array<i64: 8, 256>}, {transform_indices = @transform_1, window_bounds = array<i64: 8, 32>}, {transform_indices = @transform_2, window_bounds = array<i64: 8, 1>}, {pipeline_mode = #tpu.pipeline_mode<synchronous>, transform_indices = @transform_3, window_bounds = array<i64: 32, 256>}, {pipeline_mode = #tpu.pipeline_mode<synchronous>, transform_indices = @transform_4, window_bounds = array<i64: 1, 256>}, {pipeline_mode = #tpu.pipeline_mode<synchronous>, transform_indices = @transform_5, window_bounds = array<i64: 256, 8>}, {pipeline_mode = #tpu.pipeline_mode<synchronous>, transform_indices = @transform_6, window_bounds = array<i64: 8, 256>}, {pipeline_mode = #tpu.pipeline_mode<synchronous>, transform_indices = @transform_7, window_bounds = array<i64: 256, 64>}, {pipeline_mode = #tpu.pipeline_mode<synchronous>, transform_indices = @transform_8, window_bounds = array<i64: 32, 64>}, {pipeline_mode = #tpu.pipeline_mode<synchronous>, transform_indices = @transform_9, window_bounds = array<i64: 1, 64>}, {pipeline_mode = #tpu.pipeline_mode<synchronous>, transform_indices = @transform_10, window_bounds = array<i64: 64, 8>}, {pipeline_mode = #tpu.pipeline_mode<synchronous>, transform_indices = @transform_11, window_bounds = array<i64: 1, 8>}, {transform_indices = @transform_12, window_bounds = array<i64: 8, 8>}]} {
    %c0 = arith.constant 0 : index
    %c0_0 = arith.constant 0 : index
    %0 = vector.load %arg1[%c0, %c0_0] : memref<8x256xf32, #tpu.memory_space<vmem>>, vector<8x256xf32>
    %c0_1 = arith.constant 0 : index
    %c0_2 = arith.constant 0 : index
    %1 = vector.load %arg2[%c0_1, %c0_2] : memref<8x32xf32, #tpu.memory_space<vmem>>, vector<8x32xf32>
    %c0_3 = arith.constant 0 : index
    %c0_4 = arith.constant 0 : index
    %2 = vector.load %arg3[%c0_3, %c0_4] : memref<8x1xi32, #tpu.memory_space<vmem>>, vector<8x1xi32>
    %3 = arith.truncf %1 : vector<8x32xf32> to vector<8x32xbf16>
    %c0_5 = arith.constant 0 : index
    %c0_6 = arith.constant 0 : index
    %4 = vector.load %arg4[%c0_5, %c0_6] : memref<32x256xbf16, #tpu.memory_space<vmem>>, vector<32x256xbf16>
    %cst = arith.constant dense<0.000000e+00> : vector<8x256xf32>
    %5 = tpu.matmul %3, %4, %cst {dimension_numbers = #tpu.dot_dimension_numbers<[1], [0], [0], [1], [0, 0, 1, 1], [], []>} : vector<8x32xbf16>, vector<32x256xbf16>, vector<8x256xf32> -> vector<8x256xf32>
    %c0_7 = arith.constant 0 : index
    %c0_8 = arith.constant 0 : index
    %6 = vector.load %arg5[%c0_7, %c0_8] : memref<1x256xf32, #tpu.memory_space<vmem>>, vector<1x256xf32>
    %7 = vector.broadcast %6 : vector<1x256xf32> to vector<8x256xf32>
    %8 = arith.addf %5, %7 : vector<8x256xf32>
    %9 = arith.mulf %8, %0 : vector<8x256xf32>
    %10 = arith.truncf %9 : vector<8x256xf32> to vector<8x256xbf16>
    %c0_9 = arith.constant 0 : index
    %c0_10 = arith.constant 0 : index
    %11 = vector.load %arg6[%c0_9, %c0_10] : memref<256x8xbf16, #tpu.memory_space<vmem>>, vector<256x8xbf16>
    %cst_11 = arith.constant dense<0.000000e+00> : vector<8x8xf32>
    %12 = tpu.matmul %10, %11, %cst_11 {dimension_numbers = #tpu.dot_dimension_numbers<[1], [0], [0], [1], [0, 0, 1, 1], [], []>} : vector<8x256xbf16>, vector<256x8xbf16>, vector<8x8xf32> -> vector<8x8xf32>
    %13 = tpu.iota {dimensions = array<i32: 1>} : vector<8x8xi32>
    %14 = vector.broadcast %2 : vector<8x1xi32> to vector<8x8xi32>
    %15 = arith.cmpi slt, %13, %14 : vector<8x8xi32>
    %cst_12 = arith.constant -1.000000e+30 : f32
    %16 = vector.broadcast %cst_12 : f32 to vector<8x8xf32>
    %17 = arith.select %15, %12, %16 : vector<8x8xi1>, vector<8x8xf32>
    %cst_13 = arith.constant dense<0xFF800000> : vector<8xf32>
    %18 = vector.multi_reduction <maximumf>, %17, %cst_13 [1] : vector<8x8xf32> to vector<8xf32>
    %19 = vector.shape_cast %18 : vector<8xf32> to vector<8x1xf32>
    %20 = vector.broadcast %19 : vector<8x1xf32> to vector<8x8xf32>
    %21 = arith.subf %17, %20 : vector<8x8xf32>
    %22 = math.exp %21 : vector<8x8xf32>
    %cst_14 = arith.constant dense<0.000000e+00> : vector<8xf32>
    %23 = vector.multi_reduction <add>, %22, %cst_14 [1] : vector<8x8xf32> to vector<8xf32>
    %24 = vector.shape_cast %23 : vector<8xf32> to vector<8x1xf32>
    %25 = tpu.reciprocal %24 {approx = true} : vector<8x1xf32> -> vector<8x1xf32>
    %26 = vector.broadcast %25 : vector<8x1xf32> to vector<8x8xf32>
    %27 = arith.mulf %22, %26 : vector<8x8xf32>
    %28 = arith.truncf %27 : vector<8x8xf32> to vector<8x8xbf16>
    %c0_15 = arith.constant 0 : index
    %c0_16 = arith.constant 0 : index
    %29 = vector.load %arg7[%c0_15, %c0_16] : memref<8x256xbf16, #tpu.memory_space<vmem>>, vector<8x256xbf16>
    %cst_17 = arith.constant dense<0.000000e+00> : vector<8x256xf32>
    %30 = tpu.matmul %28, %29, %cst_17 {dimension_numbers = #tpu.dot_dimension_numbers<[1], [0], [0], [1], [0, 0, 1, 1], [], []>} : vector<8x8xbf16>, vector<8x256xbf16>, vector<8x256xf32> -> vector<8x256xf32>
    %31 = arith.mulf %30, %0 : vector<8x256xf32>
    %32 = arith.truncf %31 : vector<8x256xf32> to vector<8x256xbf16>
    %c0_18 = arith.constant 0 : index
    %c0_19 = arith.constant 0 : index
    %33 = vector.load %arg8[%c0_18, %c0_19] : memref<256x64xbf16, #tpu.memory_space<vmem>>, vector<256x64xbf16>
    %cst_20 = arith.constant dense<0.000000e+00> : vector<8x64xf32>
    %34 = tpu.matmul %32, %33, %cst_20 {dimension_numbers = #tpu.dot_dimension_numbers<[1], [0], [0], [1], [0, 0, 1, 1], [], []>} : vector<8x256xbf16>, vector<256x64xbf16>, vector<8x64xf32> -> vector<8x64xf32>
    %c0_21 = arith.constant 0 : index
    %c0_22 = arith.constant 0 : index
    %35 = vector.load %arg9[%c0_21, %c0_22] : memref<32x64xbf16, #tpu.memory_space<vmem>>, vector<32x64xbf16>
    %cst_23 = arith.constant dense<0.000000e+00> : vector<8x64xf32>
    %36 = tpu.matmul %3, %35, %cst_23 {dimension_numbers = #tpu.dot_dimension_numbers<[1], [0], [0], [1], [0, 0, 1, 1], [], []>} : vector<8x32xbf16>, vector<32x64xbf16>, vector<8x64xf32> -> vector<8x64xf32>
    %37 = arith.addf %34, %36 : vector<8x64xf32>
    %c0_24 = arith.constant 0 : index
    %c0_25 = arith.constant 0 : index
    %38 = vector.load %arg10[%c0_24, %c0_25] : memref<1x64xf32, #tpu.memory_space<vmem>>, vector<1x64xf32>
    %39 = vector.broadcast %38 : vector<1x64xf32> to vector<8x64xf32>
    %40 = arith.addf %37, %39 : vector<8x64xf32>
    %cst_26 = arith.constant 0.000000e+00 : f32
    %41 = vector.broadcast %cst_26 : f32 to vector<8x64xf32>
    %42 = arith.maximumf %40, %41 : vector<8x64xf32>
    %43 = arith.truncf %42 : vector<8x64xf32> to vector<8x64xbf16>
    %c0_27 = arith.constant 0 : index
    %c0_28 = arith.constant 0 : index
    %44 = vector.load %arg11[%c0_27, %c0_28] : memref<64x8xbf16, #tpu.memory_space<vmem>>, vector<64x8xbf16>
    %cst_29 = arith.constant dense<0.000000e+00> : vector<8x8xf32>
    %45 = tpu.matmul %43, %44, %cst_29 {dimension_numbers = #tpu.dot_dimension_numbers<[1], [0], [0], [1], [0, 0, 1, 1], [], []>} : vector<8x64xbf16>, vector<64x8xbf16>, vector<8x8xf32> -> vector<8x8xf32>
    %c0_30 = arith.constant 0 : index
    %c0_31 = arith.constant 0 : index
    %46 = vector.load %arg12[%c0_30, %c0_31] : memref<1x8xf32, #tpu.memory_space<vmem>>, vector<1x8xf32>
    %47 = vector.broadcast %46 : vector<1x8xf32> to vector<8x8xf32>
    %48 = arith.addf %45, %47 : vector<8x8xf32>
    %c0_32 = arith.constant 0 : index
    %c0_33 = arith.constant 0 : index
    %49 = vector.load %arg13[%c0_32, %c0_33] : memref<8x8xf32, #tpu.memory_space<vmem>>, vector<8x8xf32>
    tpu.vector_store %arg13[%c0_32, %c0_33], %48 {strides = array<i32>} : memref<8x8xf32, #tpu.memory_space<vmem>>, vector<8x8xf32>,
    return
  }
  func.func @transform_0(%arg0: i32) -> (i32, i32) {
    %c0_i32 = arith.constant 0 : i32
    %c0_i32_0 = arith.constant 0 : i32
    return %arg0, %c0_i32 : i32, i32
  }
  func.func @transform_1(%arg0: i32) -> (i32, i32) {
    %c0_i32 = arith.constant 0 : i32
    %c0_i32_0 = arith.constant 0 : i32
    return %arg0, %c0_i32 : i32, i32
  }
  func.func @transform_2(%arg0: i32) -> (i32, i32) {
    %c0_i32 = arith.constant 0 : i32
    %c0_i32_0 = arith.constant 0 : i32
    return %arg0, %c0_i32 : i32, i32
  }
  func.func @transform_3(%arg0: i32) -> (i32, i32) {
    %c0_i32 = arith.constant 0 : i32
    %c0_i32_0 = arith.constant 0 : i32
    %c0_i32_1 = arith.constant 0 : i32
    return %c0_i32, %c0_i32_0 : i32, i32
  }
  func.func @transform_4(%arg0: i32) -> (i32, i32) {
    %c0_i32 = arith.constant 0 : i32
    %c0_i32_0 = arith.constant 0 : i32
    %c0_i32_1 = arith.constant 0 : i32
    return %c0_i32, %c0_i32_0 : i32, i32
  }
  func.func @transform_5(%arg0: i32) -> (i32, i32) {
    %c0_i32 = arith.constant 0 : i32
    %c0_i32_0 = arith.constant 0 : i32
    %c0_i32_1 = arith.constant 0 : i32
    return %c0_i32, %c0_i32_0 : i32, i32
  }
  func.func @transform_6(%arg0: i32) -> (i32, i32) {
    %c0_i32 = arith.constant 0 : i32
    %c0_i32_0 = arith.constant 0 : i32
    %c0_i32_1 = arith.constant 0 : i32
    return %c0_i32, %c0_i32_0 : i32, i32
  }
  func.func @transform_7(%arg0: i32) -> (i32, i32) {
    %c0_i32 = arith.constant 0 : i32
    %c0_i32_0 = arith.constant 0 : i32
    %c0_i32_1 = arith.constant 0 : i32
    return %c0_i32, %c0_i32_0 : i32, i32
  }
  func.func @transform_8(%arg0: i32) -> (i32, i32) {
    %c0_i32 = arith.constant 0 : i32
    %c0_i32_0 = arith.constant 0 : i32
    %c0_i32_1 = arith.constant 0 : i32
    return %c0_i32, %c0_i32_0 : i32, i32
  }
  func.func @transform_9(%arg0: i32) -> (i32, i32) {
    %c0_i32 = arith.constant 0 : i32
    %c0_i32_0 = arith.constant 0 : i32
    %c0_i32_1 = arith.constant 0 : i32
    return %c0_i32, %c0_i32_0 : i32, i32
  }
  func.func @transform_10(%arg0: i32) -> (i32, i32) {
    %c0_i32 = arith.constant 0 : i32
    %c0_i32_0 = arith.constant 0 : i32
    %c0_i32_1 = arith.constant 0 : i32
    return %c0_i32, %c0_i32_0 : i32, i32
  }
  func.func @transform_11(%arg0: i32) -> (i32, i32) {
    %c0_i32 = arith.constant 0 : i32
    %c0_i32_0 = arith.constant 0 : i32
    %c0_i32_1 = arith.constant 0 : i32
    return %c0_i32, %c0_i32_0 : i32, i32
  }
  func.func @transform_12(%arg0: i32) -> (i32, i32) {
    %c0_i32 = arith.constant 0 : i32
    %c0_i32_0 = arith.constant 0 : i32
    return %arg0, %c0_i32 : i32, i32
  }
}

</mosaic_0001>

<bundles_post_ra>
// kernel: tpu_custom_call.1
= control target key start
LH: loop header
LB: loop body
LE: loop exit
PB: predicated region body
PF: predicated region fallthrough
CT: control target
= control target key end

     0   :  { %vm78_vm0 = vcmask 261120   ;;  %s1096_s0 = inlined_call_operand.vmem [shape: f32[8,256], index: 0, kind: input, shape index: {}]   ;;  %s1097_s1 = inlined_call_operand.vmem [shape: f32[8,32], index: 1, kind: input, shape index: {}]   ;;  %s1098_s2 = inlined_call_operand.vmem [shape: s32[8,1], index: 2, kind: input, shape index: {}]   ;;  %s1099_s3 = inlined_call_operand.vmem [shape: bf16[32,256], index: 3, kind: input, shape index: {}]   ;;  %s1100_s4 = inlined_call_operand.vmem [shape: f32[1,256], index: 4, kind: input, shape index: {}]   ;;  %s1101_s5 = inlined_call_operand.vmem [shape: bf16[256,8], index: 5, kind: input, shape index: {}]   ;;  %s1102_s6 = inlined_call_operand.vmem [shape: bf16[8,256], index: 6, kind: input, shape index: {}]   ;;  %s1103_s7 = inlined_call_operand.vmem [shape: bf16[256,64], index: 7, kind: input, shape index: {}]   ;;  %s1104_s8 = inlined_call_operand.vmem [shape: bf16[32,64], index: 8, kind: input, shape index: {}]   ;;  %s1105_s9 = inlined_call_operand.vmem [shape: f32[1,64], index: 9, kind: input, shape index: {}]   ;;  %s1106_s10 = inlined_call_operand.vmem [shape: bf16[64,8], index: 10, kind: input, shape index: {}]   ;;  %s1107_s11 = inlined_call_operand.vmem [shape: f32[1,8], index: 11, kind: input, shape index: {}]   ;;  %s1108_s12 = inlined_call_operand.hbm [shape: f32[8,8], index: 12, kind: output, shape index: {}]  }
   0x1   :  { %v602_v0 = vld [vmem:[%s1099_s3 + $0x10] sm:$0xf]  ;;  %v769_v1 = vld [vmem:[%s1099_s3 + $0x14] sm:$0xf0]  ;;  %v768_v2 = vld [vmem:[%s1099_s3 + $0x14] sm:$0xf] }
   0x2   :  { %v603_v3 = vor.u32 %v769_v1, %v602_v0  ;;  %v604_v4 = vld [vmem:[%s1099_s3 + $0x18] sm:$0xf0]  ;;  %v594_v5 = vld [vmem:[%s1099_s3] sm:$0xf]  ;;  %v767_v6 = vld [vmem:[%s1099_s3 + $0x4] sm:$0xf0] }
   0x3   :  { %v607_v7 = vor.u32 %v768_v2, %v604_v4  ;;  %v766_v8 = vld [vmem:[%s1099_s3 + $0x4] sm:$0xf]  ;;  %v596_v9 = vld [vmem:[%s1099_s3 + $0x8] sm:$0xf0]  ;;  %v595_v10 = vor.u32 %v767_v6, %v594_v5  ;;  %v777_v12 = vld [vmem:[%s1101_s5 + $0x38] sm:$0xff] }
   0x4   :  { %88 = vmatpush.bf16.msra.mxu0 %v603_v3  ;;  %v45_v11 = vld [vmem:[%s1097_s1] sm:$0xff]  ;;  %v785_v13 = vld [vmem:[%s1101_s5 + $0x78] sm:$0xff]  ;;  %v599_v14 = vor.u32 %v766_v8, %v596_v9  ;;  %240 = vmatpush.bf16.msra.mxu2 %v777_v12  ;;  %v776_v15 = vld [vmem:[%s1101_s5 + $0x30] sm:$0xff] }
   0x5   :  { %101 = vmatpush.bf16.msra.mxu1 %v607_v7  ;;  %253 = vmatpush.bf16.msra.mxu3 %v785_v13  ;;  %v784_v16 = vld [vmem:[%s1101_s5 + $0x70] sm:$0xff]  ;;  %v949_v17 = vpack.c.bf16 %v45_v11, %v45_v11 }
   0x8   :  { %89 = vmatpush.bf16.msra.mxu0 %v595_v10 }
   0x9   :  { %102 = vmatpush.bf16.msra.mxu1 %v599_v14 }
   0xa   :  { %17 = vsyncpa [#allocation3], 0  ;;  %241 = vmatpush.bf16.msra.mxu2 %v776_v15  ;;  %254 = vmatpush.bf16.msra.mxu3 %v784_v16  ;;  %v775_v18 = vld [vmem:[%s1101_s5 + $0x28] sm:$0xff]  ;;  %v774_v20 = vld [vmem:[%s1101_s5 + $0x20] sm:$0xff]  ;;  %v843_v31 = vmov 0   ;;  %v266_v47 = vlaneseq  ;;  %vm273_vm2 = vcmask 64512  }
   0xb   :  { %v783_v19 = vld [vmem:[%s1101_s5 + $0x68] sm:$0xff]  ;;  %608 = vmatmul.msk.bf16.vlgmr.msra.gmra.mxu0 %vm78_vm0, %v949_v17  ;;  %v782_v21 = vld [vmem:[%s1101_s5 + $0x60] sm:$0xff]  ;;  %v773_v22 = vld [vmem:[%s1101_s5 + $0x18] sm:$0xff]  ;;  %810 = vset.pattern.permute.xlu0 %v843_v31  ;;  %vm295_vm3 = vcmask 1043456   ;;  %vm558_vm4 = vcmask 523264  }
   0xc   :  { %609 = vmatmul.msk.bf16.vlgmr.msra.gmra.mxu1 %vm78_vm0, %v949_v17  ;;  %v781_v23 = vld [vmem:[%s1101_s5 + $0x58] sm:$0xff]  ;;  %v772_v24 = vld [vmem:[%s1101_s5 + $0x10] sm:$0xff]  ;;  %v771_v26 = vld [vmem:[%s1101_s5 + $0x8] sm:$0xff]  ;;  %v267_v48 = vand.u32 127, %v266_v47 }
   0xd   :  { %v780_v25 = vld [vmem:[%s1101_s5 + $0x50] sm:$0xff]  ;;  %v779_v27 = vld [vmem:[%s1101_s5 + $0x48] sm:$0xff]  ;;  %v770_v28 = vld [vmem:[%s1101_s5] sm:$0xff] }
   0xe   :  { %242 = vmatpush.bf16.msra.mxu2 %v775_v18  ;;  %255 = vmatpush.bf16.msra.mxu3 %v783_v19  ;;  %v778_v29 = vld [vmem:[%s1101_s5 + $0x40] sm:$0xff]  ;;  %v1005_v39 = vld [vmem:[%s1096_s0 + $0x8] sm:$0xff]  ;;  %v793_v5 = vld [vmem:[%s1103_s7 + $0x38] sm:$0xff] }
   0xf   :  { %v46_v30 = vld [vmem:[%s1098_s2] sm:$0xff]  ;;  %v801_v6 = vld [vmem:[%s1103_s7 + $0x78] sm:$0xff]  ;;  %v792_v7 = vld [vmem:[%s1103_s7 + $0x30] sm:$0xff] }
  0x10   :  { %269 = vperm.xlu0 %810, %v46_v30   ;;  %v52_v32 = vld [vmem:[%s1100_s4] sm:$0x3]  ;;  %v800_v8 = vld [vmem:[%s1103_s7 + $0x70] sm:$0xff]  ;;  %v803_v9 = vld [vmem:[%s1104_s8 + $0x8] sm:$0xff] }
  0x11   :  { %v54_v33 = vperm.slane %v52_v32, 0  ;;  %v55_v34 = vperm.slane %v52_v32, 1  ;;  %v1000_v36 = vld [vmem:[%s1096_s0] sm:$0xff]  ;;  %v791_v11 = vld [vmem:[%s1103_s7 + $0x28] sm:$0xff]  ;;  %v789_v15 = vld [vmem:[%s1103_s7 + $0x18] sm:$0xff]  ;;  %s583_s0 = sshll.u32 %s1108_s12, 4  ;;  %s584_s0 = int_to_ptr.hbm [resolvable:$true] %s583_s0 }
  0x12   :  { %243 = vmatpush.bf16.msra.mxu2 %v774_v20  ;;  %256 = vmatpush.bf16.msra.mxu3 %v782_v21  ;;  %v286_v57 = vld [vmem:[%s1102_s6] sm:$0xff]  ;;  %v799_v12 = vld [vmem:[%s1103_s7 + $0x68] sm:$0xff]  ;;  %v797_v16 = vld [vmem:[%s1103_s7 + $0x58] sm:$0xff] }
  0x13   :  { %v289_v58 = vunpack.c.h.b16 %v286_v57  ;;  %v288_v59 = vunpack.c.l.b16 %v286_v57  ;;  %v802_v10 = vld [vmem:[%s1104_s8] sm:$0xff]  ;;  %v788_v18 = vld [vmem:[%s1103_s7 + $0x10] sm:$0xff]  ;;  %v787_v21 = vld [vmem:[%s1103_s7 + $0x8] sm:$0xff] }
  0x14   :  { %v790_v13 = vld [vmem:[%s1103_s7 + $0x20] sm:$0xff]  ;;  %v796_v19 = vld [vmem:[%s1103_s7 + $0x50] sm:$0xff] }
  0x15   :  { %v291_v60 = vpack.c.b16 %v289_v58, %v289_v58  ;;  %v290_v61 = vpack.c.b16 %v288_v59, %v288_v59  ;;  %v798_v14 = vld [vmem:[%s1103_s7 + $0x60] sm:$0xff] }
  0x16   :  { %244 = vmatpush.bf16.msra.mxu2 %v773_v22  ;;  %257 = vmatpush.bf16.msra.mxu3 %v781_v23  ;;  %v795_v22 = vld [vmem:[%s1103_s7 + $0x48] sm:$0xff] }
  0x17   :  { %v300_v62 = vsel %vm295_vm3, %v291_v60, 0  ;;  %v297_v63 = vsel %vm295_vm3, %v290_v61, 0 }
  0x18   :  { %322 = vmatpush.bf16.msrb.mxu1 %v300_v62  ;;  %309 = vmatpush.bf16.msrb.mxu0 %v297_v63 }
  0x1a   :  { %245 = vmatpush.bf16.msra.mxu2 %v772_v24  ;;  %258 = vmatpush.bf16.msra.mxu3 %v780_v25 }
  0x1c   :  { %489 = vmatpush.bf16.msra.mxu1 %v793_v5  ;;  %386 = vmatpush.bf16.msra.mxu0 %v803_v9 }
  0x1e   :  { %246 = vmatpush.bf16.msra.mxu2 %v771_v26  ;;  %259 = vmatpush.bf16.msra.mxu3 %v779_v27  ;;  %v786_v26 = vld [vmem:[%s1103_s7] sm:$0xff] }
  0x1f   :  { %v794_v27 = vld [vmem:[%s1103_s7 + $0x40] sm:$0xff] }
  0x20   :  { %490 = vmatpush.bf16.msra.mxu1 %v792_v7  ;;  %387 = vmatpush.bf16.msra.mxu0 %v802_v10 }
  0x22   :  { %247 = vmatpush.bf16.msra.mxu2 %v770_v28  ;;  %260 = vmatpush.bf16.msra.mxu3 %v778_v29  ;;  %v807_v28 = vld [vmem:[%s1106_s10 + $0x18] sm:$0xff] }
  0x24   :  { %491 = vmatpush.bf16.msra.mxu1 %v791_v11 }
  0x26   :  { %502 = vmatpush.bf16.msrb.mxu2 %v801_v6  ;;  %566 = vmatpush.bf16.msrb.mxu3 %v807_v28 }
  0x28   :  { %492 = vmatpush.bf16.msra.mxu1 %v790_v13 }
  0x2a   :  { %503 = vmatpush.bf16.msrb.mxu2 %v800_v8 }
  0x2c   :  { %493 = vmatpush.bf16.msra.mxu1 %v789_v15 }
  0x2e   :  { %504 = vmatpush.bf16.msrb.mxu2 %v799_v12 }
  0x30   :  { %494 = vmatpush.bf16.msra.mxu1 %v788_v18 }
  0x32   :  { %505 = vmatpush.bf16.msrb.mxu2 %v798_v14 }
  0x34   :  { %495 = vmatpush.bf16.msra.mxu1 %v787_v21 }
  0x36   :  { %506 = vmatpush.bf16.msrb.mxu2 %v797_v16 }
  0x38   :  { %496 = vmatpush.bf16.msra.mxu1 %v786_v26 }
  0x3a   :  { %507 = vmatpush.bf16.msrb.mxu2 %v796_v19 }
  0x3e   :  { %508 = vmatpush.bf16.msrb.mxu2 %v795_v22 }
  0x42   :  { %509 = vmatpush.bf16.msrb.mxu2 %v794_v27 }
  0x82   :  { %v270_v49 = vpop.permute.xlu0 %269 }
  0x83   :  { %vm271_vm1 = vcmp.lt.s32.totalorder %v267_v48, %v270_v49 }
  0x88   :  { %v91_v35 = vpop.f32.mrf.mxu0 }
  0x89   :  { %v92_v37 = vadd.f32 %v91_v35, %v54_v33  ;;  %v104_v38 = vpop.f32.mrf.mxu1 }
  0x8a   :  { %v105_v40 = vadd.f32 %v104_v38, %v55_v34 }
  0x8b   :  { %v108_v41 = vmul.f32 %v92_v37, %v1000_v36 }
  0x8c   :  { %v109_v42 = vmul.f32 %v105_v40, %v1005_v39  ;;  %v806_v40 = vld [vmem:[%s1106_s10 + $0x10] sm:$0xff] }
  0x8d   :  { %v110_v43 = vpack.c.bf16 %v108_v41, %v108_v41  ;;  %567 = vmatpush.bf16.msrb.mxu3 %v806_v40  ;;  %v805_v41 = vld [vmem:[%s1106_s10 + $0x8] sm:$0xff] }
  0x8e   :  { %v111_v44 = vpack.c.bf16 %v109_v42, %v109_v42 }
  0x8f   :  { %248 = vmatmul.bf16.vlgmr.msra.gmra.mxu2 %v110_v43  ;;  %v811_v43 = vld [vmem:[%s1105_s9] ss:$0 sm:$0xff] }
  0x90   :  { %261 = vmatmul.bf16.vlgmr.msra.gmra.mxu3 %v111_v44  ;;  %v93_v45 = vpop.f32.mrf.mxu0 }
  0x91   :  { %v106_v46 = vpop.f32.mrf.mxu1  ;;  %568 = vmatpush.bf16.msrb.mxu3 %v805_v41 }
 0x112   :  { %v249_v50 = vpop.f32.mrf.mxu2 }
 0x113   :  { %v262_v51 = vpop.f32.mrf.mxu3 }
 0x114   :  { %v263_v52 = vadd.f32 %v262_v51, %v249_v50  ;;  %v812_v51 = vld [vmem:[%s1107_s11] ss:$0 sm:$0xff] }
 0x116   :  { %v272_v53 = vsel %vm271_vm1, %v263_v52, -1e+30 }
 0x117   :  { %v274_v54 = vsel %vm273_vm2, %v272_v53, -inf }
 0x118   :  { %275 = vmax.xlane.f32.xlu0 %v274_v54 }
 0x11a   :  { %v251_v55 = vpop.f32.mrf.mxu2 }
 0x11b   :  { %v264_v56 = vpop.f32.mrf.mxu3 }
 0x18b   :  { %v276_v0 = vpop.xlane.xlu0 %275 }
 0x18c   :  { %v277_v1 = vsub.f32 %v272_v53, %v276_v0 }
 0x18e   :  { %v278_v2 = vmul.f32 1.442695, %v277_v1 }
 0x190   :  { %813 = vpow2.f32 %v278_v2 }
 0x196   :  { %v814_v3 = vpop.eup %813 }
 0x197   :  { %v280_v4 = vsel %vm273_vm2, %v814_v3, 0.0 }
 0x198   :  { %281 = vadd.xlane.f32.xlu1 %v280_v4 }
 0x20b   :  { %v282_v20 = vpop.xlane.xlu1 %281 }
 0x20c   :  { %815 = vrcp.f32 %v282_v20 }
 0x212   :  { %v816_v23 = vpop.eup %815 }
 0x213   :  { %v284_v24 = vmul.f32 %v816_v23, %v814_v3 }
 0x215   :  { %v285_v25 = vpack.c.bf16 %v284_v24, %v284_v24 }
 0x217   :  { %674 = vmatmul.msk.bf16.vlgmr.msrb.gmra.mxu0 %vm273_vm2, %v285_v25  ;;  %675 = vmatmul.msk.bf16.vlgmr.msrb.gmra.mxu1 %vm273_vm2, %v285_v25 }
 0x227   :  { %684 = vmatmul.msk.bf16.vlgmr.msra.gmra.mxu0 %vm78_vm0, %v949_v17 }
 0x294   :  { %v311_v29 = vpop.f32.mrf.mxu0  ;;  %v324_v30 = vpop.f32.mrf.mxu1 }
 0x295   :  { %v328_v31 = vmul.f32 %v311_v29, %v1000_v36  ;;  %v329_v17 = vmul.f32 %v324_v30, %v1005_v39  ;;  %v804_v36 = vld [vmem:[%s1106_s10] sm:$0xff]  ;;  %s844_s10 = smov [#allocation2]  }
 0x296   :  { %569 = vmatpush.bf16.msrb.mxu3 %v804_v36  ;;  %s581_s18 = sshll.u32 %s844_s10, 4  ;;  %s582_s18 = int_to_ptr.vmem [resolvable:$true] %s581_s18 }
 0x297   :  { %v330_v32 = vpack.c.bf16 %v328_v31, %v328_v31  ;;  %v331_v33 = vpack.c.bf16 %v329_v17, %v329_v17 }
 0x299   :  { %497 = vmatmul.bf16.vlgmr.msra.gmra.mxu1 %v330_v32  ;;  %510 = vmatmul.bf16.vlgmr.msrb.gmra.mxu2 %v331_v33 }
 0x29c   :  { %v313_v34 = vpop.f32.mrf.mxu0  ;;  %v326_v35 = vpop.f32.mrf.mxu1 }
 0x2a4   :  { %v389_v37 = vpop.f32.mrf.mxu0 }
 0x2ac   :  { %v391_v38 = vpop.f32.mrf.mxu0 }
 0x316   :  { %v498_v39 = vpop.f32.mrf.mxu1 }
 0x317   :  { %v499_v42 = vadd.f32 %v498_v39, %v389_v37 }
 0x31c   :  { %v511_v44 = vpop.f32.mrf.mxu2 }
 0x31d   :  { %v512_v45 = vadd.f32 %v511_v44, %v499_v42 }
 0x31e   :  { %v500_v46 = vpop.f32.mrf.mxu1 }
 0x31f   :  { %v519_v47 = vadd.f32 %v811_v43, %v512_v45 }
 0x321   :  { %v520_v48 = vmax.f32 %v519_v47, 0.0 }
 0x323   :  { %v521_v49 = vpack.c.bf16 %v520_v48, %v520_v48 }
 0x324   :  { %v513_v50 = vpop.f32.mrf.mxu2 }
 0x325   :  { %765 = vmatmul.msk.bf16.vlgmr.msrb.gmra.mxu3 %vm558_vm4, %v521_v49 }
 0x3a8   :  { %v571_v52 = vpop.f32.mrf.mxu3 }
 0x3a9   :  { %v572_v53 = vadd.f32 %v812_v51, %v571_v52 }
 0x3ab   :  { %575 = vst.msk [vmem:[#allocation2] sm:$0xff] %vm273_vm2, %v572_v53 }
 0x3ac   :  { %586 = dma.vmem_to_hbm [thread:$0]  %s582_s18, 128, %s584_s0, [#allocation3]  }
 0x3b0   :  { %v573_v54 = vpop.f32.mrf.mxu3 }
 0x3b1   :  { %841 = dma.done.wait [#allocation3], 128  }
 0x3b2   :  { %842 = vsyncadd [#allocation3], 4294967168 }
 0x3b3   :  { %591 = vsyncpa [#allocation3], 1 }

</bundles_post_ra>
